<compile_context>
chip_gen: v5e
topology: v5e:2x2
jax: 0.10.0
libtpu: 0.0.40
codegen_flags: <defaults>
</compile_context>

<pallas_src>
import functools
import math

import jax
import jax.numpy as jnp
from jax import lax
from jax.experimental import pallas as pl
from jax.experimental.pallas import tpu as pltpu

LN_EPS = 1e-5
_INV_SQRT2 = 1.0 / math.sqrt(2.0)


def _round_up(n, m):
    return ((n + m - 1) // m) * m


def _cdiv(a, b):
    return (a + b - 1) // b


def _vmem_budget_bytes():
    """Generation-aware VMEM budget: physical capacity minus compiler headroom."""
    try:
        cap = int(pltpu.get_tpu_info().vmem_capacity_bytes)
    except Exception:
        cap = 64 * 1024 * 1024  # conservative (v7x-sized) fallback
    return max(32 * 1024 * 1024, cap - 12 * 1024 * 1024)


def _choose_tn(inner, cap):
    """Inner-dim tile: lane-aligned multiple of 128, or the whole inner dim if it fits."""
    cap = max(int(cap), 128)
    if inner <= cap:
        return inner
    c = (cap // 128) * 128
    t = c
    while t >= 128:
        if inner % t == 0:
            return t          # clean divisor -> no weight padding needed
        t -= 128
    return c                  # no clean divisor: inner gets zero-padded to a multiple of c


def _working_set_bytes(tm, tn, d, x_bytes, out_bytes, separate_acc):
    wgt = 2 * 2 * d * tn * 2            # W1 + W2 blocks, double-buffered, bf16
    xb = 2 * tm * d * x_bytes           # input rows, double-buffered
    ob = 2 * tm * d * out_bytes         # output rows, double-buffered
    xn = tm * d * 2                     # bf16 normalized-rows scratch
    acc = tm * d * 4 if separate_acc else 0
    tmp = 2 * tm * tn * 4               # f32 matmul-1 / GELU temporaries
    return wgt + xb + ob + xn + acc + tmp


def _ff_kernel(x_ref, g_ref, b_ref, w1_ref, w2_ref, o_ref, *scratch, acc_into_out):
    # Grid: (row tiles ["parallel"], inner tiles ["arbitrary" = reduction for matmul #2]).
    k = pl.program_id(1)
    if acc_into_out:
        (xn_ref,) = scratch
        acc_ref = o_ref                  # f32 output doubles as the resident accumulator
    else:
        xn_ref, acc_ref = scratch

    @pl.when(k == 0)
    def _():
        # LayerNorm over the feature (lane) axis, once per row tile, in f32.
        x = x_ref[...].astype(jnp.float32)
        mean = jnp.mean(x, axis=-1, keepdims=True)
        centered = x - mean
        var = jnp.mean(centered * centered, axis=-1, keepdims=True)
        xn = centered * lax.rsqrt(var + LN_EPS)
        xn = xn * g_ref[...].astype(jnp.float32) + b_ref[...].astype(jnp.float32)
        xn_ref[...] = xn.astype(xn_ref.dtype)        # bf16 for the MXU
        acc_ref[...] = jnp.zeros_like(acc_ref)

    # Linear(dim -> inner tile): bf16 operands, f32 accumulation (MXU).
    h = jnp.dot(xn_ref[...], w1_ref[...], preferred_element_type=jnp.float32)

    # Exact GELU (erf form, matches torch nn.GELU default), in f32.
    h = 0.5 * h * (1.0 + lax.erf(h * _INV_SQRT2))

    # Linear(inner tile -> dim): accumulate into the resident f32 buffer (MXU).
    acc_ref[...] += jnp.dot(h.astype(w2_ref.dtype), w2_ref[...],
                            preferred_element_type=jnp.float32)

    if not acc_into_out:
        @pl.when(k == pl.num_programs(1) - 1)
        def _():
            o_ref[...] = acc_ref[...].astype(o_ref.dtype)


def feed_forward(x, gamma, beta, w1, w2, *, row_tile=512, inner_tile=512):
    """Fused LayerNorm -> Linear(D, inner) -> GELU -> Linear(inner, D).

    x: [..., D]; gamma/beta: [D]; w1: [D, inner]; w2: [inner, D].
    For best performance pass w1/w2 already in bfloat16 (see prepare_params) so no
    per-call HBM round-trip cast happens in the hot path.
    """
    orig_shape = x.shape
    D = orig_shape[-1]
    inner = w1.shape[1]

    # Weights must be bf16 for the MXU; prefer converting once outside this function.
    if w1.dtype != jnp.bfloat16:
        w1 = w1.astype(jnp.bfloat16)
    if w2.dtype != jnp.bfloat16:
        w2 = w2.astype(jnp.bfloat16)

    x2d = x.reshape(-1, D)
    N = x2d.shape[0]
    out_dtype = x.dtype
    acc_into_out = (out_dtype == jnp.float32)

    budget = _vmem_budget_bytes()

    # Row tile: balanced so padding waste is at most 7 rows per tile.
    n_tiles = max(1, _cdiv(N, row_tile))
    tm = _round_up(_cdiv(N, n_tiles), 8)
    # Keep >= 2 row tiles once rows are plentiful (v7x has 2 TensorCores on the
    # "parallel" axis; splitting tiny batches is not worth the extra weight traffic).
    if _cdiv(N, tm) < 2 and N >= 512:
        tm = _round_up(_cdiv(N, 2), 8)

    # Inner-dim tile: lane-aligned multiple of 128 (or the whole inner dim).
    tn = _choose_tn(inner, inner_tile)

    # Shrink tiles until the double-buffered working set fits the VMEM budget.
    x_bytes = jnp.dtype(x.dtype).itemsize
    o_bytes = jnp.dtype(out_dtype).itemsize
    tm_floor = 256 if tm > 256 else tm
    while _working_set_bytes(tm, tn, D, x_bytes, o_bytes, not acc_into_out) > budget:
        if tm > tm_floor:
            tm = max(tm_floor, _round_up(tm // 2, 8))
        elif tn > 256:
            new_tn = _choose_tn(inner, max(256, tn // 2))
            if new_tn >= tn:
                break
            tn = new_tn
        elif tm > 64:
            tm = max(64, _round_up(tm // 2, 8))
        else:
            break

    n_tiles = _cdiv(N, tm)
    n_pad = n_tiles * tm
    if n_pad != N:
        x2d = jnp.pad(x2d, ((0, n_pad - N), (0, 0)))

    inner_pad = _round_up(inner, tn)
    if inner_pad != inner:
        # Zero-padded inner columns/rows contribute exactly 0 (GELU(0) == 0).
        w1 = jnp.pad(w1, ((0, 0), (0, inner_pad - inner)))
        w2 = jnp.pad(w2, ((0, inner_pad - inner), (0, 0)))

    gamma2d = gamma.reshape(1, D).astype(jnp.float32)
    beta2d = beta.reshape(1, D).astype(jnp.float32)

    grid = (n_tiles, inner_pad // tn)

    scratch = [pltpu.VMEM((tm, D), jnp.bfloat16)]        # normalized rows (reused over k)
    if not acc_into_out:
        scratch.append(pltpu.VMEM((tm, D), jnp.float32))  # separate f32 accumulator

    out2d = pl.pallas_call(
        functools.partial(_ff_kernel, acc_into_out=acc_into_out),
        out_shape=jax.ShapeDtypeStruct((n_pad, D), out_dtype),
        grid_spec=pltpu.PrefetchScalarGridSpec(
            num_scalar_prefetch=0,
            grid=grid,
            in_specs=[
                pl.BlockSpec((tm, D), lambda i, k: (i, 0)),   # x rows
                pl.BlockSpec((1, D), lambda i, k: (0, 0)),    # LN gamma
                pl.BlockSpec((1, D), lambda i, k: (0, 0)),    # LN beta
                pl.BlockSpec((D, tn), lambda i, k: (0, k)),   # W1 inner-tile
                pl.BlockSpec((tn, D), lambda i, k: (k, 0)),   # W2 inner-tile
            ],
            out_specs=pl.BlockSpec((tm, D), lambda i, k: (i, 0)),
            scratch_shapes=scratch,
        ),
        compiler_params=pltpu.CompilerParams(
            dimension_semantics=("parallel", "arbitrary"),
            vmem_limit_bytes=budget,
        ),
    )(x2d, gamma2d, beta2d, w1, w2)

    if n_pad != N:
        out2d = out2d[:N]
    return out2d.reshape(orig_shape)


def init_params(key, dim, mult=4, dtype=jnp.float32):
    """Deterministic synthetic init mirroring the torch module's parameter shapes."""
    inner = dim * mult
    k1, k2 = jax.random.split(key)
    bound1 = 1.0 / math.sqrt(dim)
    bound2 = 1.0 / math.sqrt(inner)
    # stored transposed vs torch ([in, out]) so the kernel does x @ W
    w1 = jax.random.uniform(k1, (dim, inner), dtype, minval=-bound1, maxval=bound1)
    w2 = jax.random.uniform(k2, (inner, dim), dtype, minval=-bound2, maxval=bound2)
    gamma = jnp.ones((dim,), dtype)   # nn.LayerNorm default weight
    beta = jnp.zeros((dim,), dtype)   # nn.LayerNorm default bias
    return gamma, beta, w1, w2


def prepare_params(gamma, beta, w1, w2):
    """Cast weights to bf16 ONCE (outside the hot path); store/pass these thereafter."""
    return gamma, beta, w1.astype(jnp.bfloat16), w2.astype(jnp.bfloat16)


def _reference(x, gamma, beta, w1, w2):
    """Same math as the kernel: f32 LN/GELU, bf16 matmul operands, f32 accumulate."""
    xf = x.astype(jnp.float32)
    mean = jnp.mean(xf, -1, keepdims=True)
    var = jnp.mean((xf - mean) ** 2, -1, keepdims=True)
    xn = (xf - mean) * lax.rsqrt(var + LN_EPS) * gamma.astype(jnp.float32) \
         + beta.astype(jnp.float32)
    h = jnp.dot(xn.astype(jnp.bfloat16), w1.astype(jnp.bfloat16),
                preferred_element_type=jnp.float32)
    h = 0.5 * h * (1.0 + lax.erf(h * _INV_SQRT2))
    y = jnp.dot(h.astype(jnp.bfloat16), w2.astype(jnp.bfloat16),
                preferred_element_type=jnp.float32)
    return y.astype(x.dtype)


if __name__ == "__main__":
    key = jax.random.PRNGKey(0)
    kx1, kx2, kx3, kp1, kp2 = jax.random.split(key, 5)

    # Test 1: basic small shape (f32 activations, accumulate directly into output).
    B, S, D, MULT = 2, 8, 32, 4
    x1 = jax.random.normal(kx1, (B, S, D), jnp.float32)
    gamma1, beta1, w1_1, w2_1 = init_params(kp1, D, MULT)
    params1 = prepare_params(gamma1, beta1, w1_1, w2_1)     # bf16 weights, cast once
    out1 = jax.block_until_ready(feed_forward(x1, *params1))
    ref1 = _reference(x1, gamma1, beta1, w1_1, w2_1)
    assert out1.shape == x1.shape
    assert jnp.allclose(out1, ref1, atol=1e-2, rtol=1e-2), "test1 mismatch"

    # Test 2: ragged row count (padding) + multi-step inner reduction (k-loop of 2).
    D2, MULT2 = 64, 4
    x2 = jax.random.normal(kx2, (2, 7, D2), jnp.float32)
    gamma2, beta2, w1_2, w2_2 = init_params(kp2, D2, MULT2)
    params2 = prepare_params(gamma2, beta2, w1_2, w2_2)
    out2 = jax.block_until_ready(feed_forward(x2, *params2, inner_tile=128))
    ref2 = _reference(x2, gamma2, beta2, w1_2, w2_2)
    assert out2.shape == x2.shape
    assert jnp.allclose(out2, ref2, atol=1e-2, rtol=1e-2), "test2 mismatch"

    # Test 3: bf16 activations (separate f32 accumulator scratch path).
    x3 = jax.random.normal(kx3, (B, S, D), jnp.float32).astype(jnp.bfloat16)
    out3 = jax.block_until_ready(feed_forward(x3, *params1))
    ref3 = _reference(x3, gamma1, beta1, w1_1, w2_1)
    assert out3.shape == x3.shape
    assert jnp.allclose(out3.astype(jnp.float32), ref3.astype(jnp.float32),
                        atol=5e-2, rtol=5e-2), "test3 mismatch"

    print("KERNEL_OK")
</pallas_src>

<mosaic_0001>
module attributes {stable_mosaic.version = 11 : i64} {
  func.func @_ff_kernel(%arg0: i32, %arg1: i32, %arg2: memref<16x32xf32, #tpu.memory_space<vmem>>, %arg3: memref<1x32xf32, #tpu.memory_space<vmem>>, %arg4: memref<1x32xf32, #tpu.memory_space<vmem>>, %arg5: memref<32x128xbf16, #tpu.memory_space<vmem>>, %arg6: memref<128x32xbf16, #tpu.memory_space<vmem>>, %arg7: memref<16x32xf32, #tpu.memory_space<vmem>>, %arg8: memref<16x32xbf16, #tpu.memory_space<vmem>>) attributes {dimension_semantics = [#tpu.dimension_semantics<parallel>, #tpu.dimension_semantics<arbitrary>], iteration_bounds = array<i64: 1, 1>, scalar_prefetch = 0 : i64, scratch_operands = 1 : i64, tpu.core_type = #tpu.core_type<tc>, window_params = [{transform_indices = @transform_0, window_bounds = array<i64: 16, 32>}, {pipeline_mode = #tpu.pipeline_mode<synchronous>, transform_indices = @transform_1, window_bounds = array<i64: 1, 32>}, {pipeline_mode = #tpu.pipeline_mode<synchronous>, transform_indices = @transform_2, window_bounds = array<i64: 1, 32>}, {transform_indices = @transform_3, window_bounds = array<i64: 32, 128>}, {transform_indices = @transform_4, window_bounds = array<i64: 128, 32>}, {transform_indices = @transform_5, window_bounds = array<i64: 16, 32>}]} {
    %c0_i32 = arith.constant 0 : i32
    %0 = arith.cmpi eq, %arg1, %c0_i32 : i32
    %1 = arith.extui %0 : i1 to i32
    %c0_i32_0 = arith.constant 0 : i32
    %2 = arith.cmpi ne, %1, %c0_i32_0 : i32
    scf.if %2 {
      %c0_14 = arith.constant 0 : index
      %c0_15 = arith.constant 0 : index
      %20 = vector.load %arg2[%c0_14, %c0_15] : memref<16x32xf32, #tpu.memory_space<vmem>>, vector<16x32xf32>
      %cst_16 = arith.constant dense<0.000000e+00> : vector<16xf32>
      %21 = vector.multi_reduction <add>, %20, %cst_16 [1] : vector<16x32xf32> to vector<16xf32>
      %22 = vector.shape_cast %21 : vector<16xf32> to vector<16x1xf32>
      %cst_17 = arith.constant 3.200000e+01 : f32
      %23 = vector.broadcast %cst_17 : f32 to vector<16x1xf32>
      %24 = arith.divf %22, %23 : vector<16x1xf32>
      %25 = vector.broadcast %24 : vector<16x1xf32> to vector<16x32xf32>
      %26 = arith.subf %20, %25 : vector<16x32xf32>
      %27 = arith.mulf %26, %26 : vector<16x32xf32>
      %cst_18 = arith.constant dense<0.000000e+00> : vector<16xf32>
      %28 = vector.multi_reduction <add>, %27, %cst_18 [1] : vector<16x32xf32> to vector<16xf32>
      %29 = vector.shape_cast %28 : vector<16xf32> to vector<16x1xf32>
      %cst_19 = arith.constant 3.200000e+01 : f32
      %30 = vector.broadcast %cst_19 : f32 to vector<16x1xf32>
      %31 = arith.divf %29, %30 : vector<16x1xf32>
      %cst_20 = arith.constant 9.99999974E-6 : f32
      %32 = vector.broadcast %cst_20 : f32 to vector<16x1xf32>
      %33 = arith.addf %31, %32 : vector<16x1xf32>
      %34 = math.rsqrt %33 : vector<16x1xf32>
      %35 = vector.broadcast %34 : vector<16x1xf32> to vector<16x32xf32>
      %36 = arith.mulf %26, %35 : vector<16x32xf32>
      %c0_21 = arith.constant 0 : index
      %c0_22 = arith.constant 0 : index
      %37 = vector.load %arg3[%c0_21, %c0_22] : memref<1x32xf32, #tpu.memory_space<vmem>>, vector<1x32xf32>
      %38 = vector.broadcast %37 : vector<1x32xf32> to vector<16x32xf32>
      %39 = arith.mulf %36, %38 : vector<16x32xf32>
      %c0_23 = arith.constant 0 : index
      %c0_24 = arith.constant 0 : index
      %40 = vector.load %arg4[%c0_23, %c0_24] : memref<1x32xf32, #tpu.memory_space<vmem>>, vector<1x32xf32>
      %41 = vector.broadcast %40 : vector<1x32xf32> to vector<16x32xf32>
      %42 = arith.addf %39, %41 : vector<16x32xf32>
      %43 = arith.truncf %42 : vector<16x32xf32> to vector<16x32xbf16>
      %c0_25 = arith.constant 0 : index
      %c0_26 = arith.constant 0 : index
      %44 = vector.load %arg8[%c0_25, %c0_26] : memref<16x32xbf16, #tpu.memory_space<vmem>>, vector<16x32xbf16>
      tpu.vector_store %arg8[%c0_25, %c0_26], %43 {strides = array<i32>} : memref<16x32xbf16, #tpu.memory_space<vmem>>, vector<16x32xbf16>,
      %cst_27 = arith.constant 0.000000e+00 : f32
      %45 = vector.broadcast %cst_27 : f32 to vector<16x32xf32>
      %c0_28 = arith.constant 0 : index
      %c0_29 = arith.constant 0 : index
      %46 = vector.load %arg7[%c0_28, %c0_29] : memref<16x32xf32, #tpu.memory_space<vmem>>, vector<16x32xf32>
      tpu.vector_store %arg7[%c0_28, %c0_29], %45 {strides = array<i32>} : memref<16x32xf32, #tpu.memory_space<vmem>>, vector<16x32xf32>,
    } else {
    }
    %c0 = arith.constant 0 : index
    %c0_1 = arith.constant 0 : index
    %3 = vector.load %arg8[%c0, %c0_1] : memref<16x32xbf16, #tpu.memory_space<vmem>>, vector<16x32xbf16>
    %c0_2 = arith.constant 0 : index
    %c0_3 = arith.constant 0 : index
    %4 = vector.load %arg5[%c0_2, %c0_3] : memref<32x128xbf16, #tpu.memory_space<vmem>>, vector<32x128xbf16>
    %cst = arith.constant dense<0.000000e+00> : vector<16x128xf32>
    %5 = tpu.matmul %3, %4, %cst {dimension_numbers = #tpu.dot_dimension_numbers<[1], [0], [0], [1], [0, 0, 1, 1], [], []>} : vector<16x32xbf16>, vector<32x128xbf16>, vector<16x128xf32> -> vector<16x128xf32>
    %cst_4 = arith.constant 5.000000e-01 : f32
    %6 = vector.broadcast %cst_4 : f32 to vector<16x128xf32>
    %7 = arith.mulf %6, %5 : vector<16x128xf32>
    %cst_5 = arith.constant 0.707106769 : f32
    %8 = vector.broadcast %cst_5 : f32 to vector<16x128xf32>
    %9 = arith.mulf %5, %8 : vector<16x128xf32>
    %10 = math.erf %9 : vector<16x128xf32>
    %cst_6 = arith.constant 1.000000e+00 : f32
    %11 = vector.broadcast %cst_6 : f32 to vector<16x128xf32>
    %12 = arith.addf %11, %10 : vector<16x128xf32>
    %13 = arith.mulf %7, %12 : vector<16x128xf32>
    %c0_7 = arith.constant 0 : index
    %c0_8 = arith.constant 0 : index
    %14 = vector.load %arg7[%c0_7, %c0_8] : memref<16x32xf32, #tpu.memory_space<vmem>>, vector<16x32xf32>
    %15 = arith.truncf %13 : vector<16x128xf32> to vector<16x128xbf16>
    %c0_9 = arith.constant 0 : index
    %c0_10 = arith.constant 0 : index
    %16 = vector.load %arg6[%c0_9, %c0_10] : memref<128x32xbf16, #tpu.memory_space<vmem>>, vector<128x32xbf16>
    %cst_11 = arith.constant dense<0.000000e+00> : vector<16x32xf32>
    %17 = tpu.matmul %15, %16, %cst_11 {dimension_numbers = #tpu.dot_dimension_numbers<[1], [0], [0], [1], [0, 0, 1, 1], [], []>} : vector<16x128xbf16>, vector<128x32xbf16>, vector<16x32xf32> -> vector<16x32xf32>
    %18 = arith.addf %14, %17 : vector<16x32xf32>
    %c0_12 = arith.constant 0 : index
    %c0_13 = arith.constant 0 : index
    %19 = vector.load %arg7[%c0_12, %c0_13] : memref<16x32xf32, #tpu.memory_space<vmem>>, vector<16x32xf32>
    tpu.vector_store %arg7[%c0_12, %c0_13], %18 {strides = array<i32>} : memref<16x32xf32, #tpu.memory_space<vmem>>, vector<16x32xf32>,
    return
  }
  func.func @transform_0(%arg0: i32, %arg1: i32) -> (i32, i32) {
    %c0_i32 = arith.constant 0 : i32
    %c0_i32_0 = arith.constant 0 : i32
    return %arg0, %c0_i32 : i32, i32
  }
  func.func @transform_1(%arg0: i32, %arg1: i32) -> (i32, i32) {
    %c0_i32 = arith.constant 0 : i32
    %c0_i32_0 = arith.constant 0 : i32
    %c0_i32_1 = arith.constant 0 : i32
    return %c0_i32, %c0_i32_0 : i32, i32
  }
  func.func @transform_2(%arg0: i32, %arg1: i32) -> (i32, i32) {
    %c0_i32 = arith.constant 0 : i32
    %c0_i32_0 = arith.constant 0 : i32
    %c0_i32_1 = arith.constant 0 : i32
    return %c0_i32, %c0_i32_0 : i32, i32
  }
  func.func @transform_3(%arg0: i32, %arg1: i32) -> (i32, i32) {
    %c0_i32 = arith.constant 0 : i32
    %c0_i32_0 = arith.constant 0 : i32
    return %c0_i32, %arg1 : i32, i32
  }
  func.func @transform_4(%arg0: i32, %arg1: i32) -> (i32, i32) {
    %c0_i32 = arith.constant 0 : i32
    %c0_i32_0 = arith.constant 0 : i32
    return %arg1, %c0_i32 : i32, i32
  }
  func.func @transform_5(%arg0: i32, %arg1: i32) -> (i32, i32) {
    %c0_i32 = arith.constant 0 : i32
    %c0_i32_0 = arith.constant 0 : i32
    return %arg0, %c0_i32 : i32, i32
  }
}

</mosaic_0001>

<bundles_post_ra>
// kernel: tpu_custom_call.1
= control target key start
LH: loop header
LB: loop body
LE: loop exit
PB: predicated region body
PF: predicated region fallthrough
CT: control target
= control target key end

     0   :  { %vm28_vm0 = vcmask 261120   ;;  %s539_s0 = inlined_call_operand.vmem [shape: f32[16,32], index: 0, kind: input, shape index: {}]   ;;  %s540_s1 = inlined_call_operand.vmem [shape: f32[1,32], index: 1, kind: input, shape index: {}]   ;;  %s541_s2 = inlined_call_operand.vmem [shape: f32[1,32], index: 2, kind: input, shape index: {}]   ;;  %s542_s3 = inlined_call_operand.vmem [shape: bf16[32,128], index: 3, kind: input, shape index: {}]   ;;  %s543_s4 = inlined_call_operand.vmem [shape: bf16[128,32], index: 4, kind: input, shape index: {}]   ;;  %s544_s5 = inlined_call_operand.hbm [shape: f32[16,32], index: 5, kind: output, shape index: {}]  }
   0x1   :  { %v26_v0 = vld [vmem:[%s539_s0] sm:$0xff] }
   0x2   :  { %v29_v1 = vsel %vm28_vm0, %v26_v0, 0.0 }
   0x3   :  { %10 = vsyncpa [#allocation4], 0  ;;  %30 = vadd.xlane.f32.xlu0 %v29_v1  ;;  %v27_v2 = vld [vmem:[%s539_s0 + $0x8] sm:$0xff]  ;;  %v432_v4 = vmov 32.0   ;;  %v379_v27 = vld [vmem:[%s542_s3] sm:$0xff]  ;;  %vm94_vm6 = vcmask 257024  }
   0x4   :  { %v32_v3 = vsel %vm28_vm0, %v27_v2, 0.0  ;;  %396 = vrcp.f32 %v432_v4  ;;  %v380_v24 = vld [vmem:[%s542_s3 + $0x8] sm:$0xff]  ;;  %v394_v37 = vld [vmem:[%s540_s1] ss:$0 sm:$0xff]  ;;  %v388_v54 = vld [vmem:[%s543_s4 + $0x38] sm:$0xff]  ;;  %s319_s20 = sshll.u32 %s544_s5, 4  ;;  %s320_s20 = int_to_ptr.hbm [resolvable:$true] %s319_s20 }
   0x5   :  { %132 = vmatpush.bf16.msra.mxu0 %v380_v24  ;;  %v395_v40 = vld [vmem:[%s541_s2] ss:$0 sm:$0xff]  ;;  %295 = vmatpush.bf16.msra.mxu1 %v388_v54  ;;  %v387_v58 = vld [vmem:[%s543_s4 + $0x30] sm:$0xff]  ;;  %v386_v62 = vld [vmem:[%s543_s4 + $0x28] sm:$0xff]  ;;  %s435_s21 = smov 128   ;;  %s436_s0 = smov 8  }
   0x6   :  { %v385_v4 = vld [vmem:[%s543_s4 + $0x20] sm:$0xff] }
   0x9   :  { %133 = vmatpush.bf16.msra.mxu0 %v379_v27  ;;  %296 = vmatpush.bf16.msra.mxu1 %v387_v58 }
   0xa   :  { %v397_v5 = vpop.eup %396 }
   0xb   :  { %33 = vadd.xlane.f32.xlu0 %v32_v3  ;;  %v36_v6 = vmul.f32 32.0, %v397_v5  ;;  %vm40_vm1 = vweird.f32 %v397_v5 }
   0xd   :  { %v37_v7 = vsub.f32 1.0, %v36_v6  ;;  %297 = vmatpush.bf16.msra.mxu1 %v386_v62 }
   0xf   :  { %v38_v8 = vmul.f32 %v397_v5, %v37_v7 }
  0x11   :  { %v39_v9 = vadd.f32 %v397_v5, %v38_v8  ;;  %298 = vmatpush.bf16.msra.mxu1 %v385_v4 }
  0x13   :  { %v41_v10 = vsel %vm40_vm1, %v397_v5, %v39_v9 }
  0x76   :  { %v31_v11 = vpop.xlane.xlu0 %30 }
  0x77   :  { %v42_v12 = vmul.f32 %v41_v10, %v31_v11 }
  0x79   :  { %v44_v13 = vsub.f32 %v26_v0, %v42_v12 }
  0x7b   :  { %v46_v14 = vmul.f32 %v44_v13, %v44_v13 }
  0x7d   :  { %v48_v15 = vsel %vm28_vm0, %v46_v14, 0.0 }
  0x7e   :  { %49 = vadd.xlane.f32.xlu1 %v48_v15  ;;  %v34_v16 = vpop.xlane.xlu0 %33 }
  0x7f   :  { %v43_v17 = vmul.f32 %v41_v10, %v34_v16 }
  0x81   :  { %v45_v18 = vsub.f32 %v27_v2, %v43_v17 }
  0x83   :  { %v47_v19 = vmul.f32 %v45_v18, %v45_v18 }
  0x85   :  { %v51_v20 = vsel %vm28_vm0, %v47_v19, 0.0 }
  0x86   :  { %52 = vadd.xlane.f32.xlu1 %v51_v20 }
  0xf1   :  { %v50_v21 = vpop.xlane.xlu1 %49 }
  0xf2   :  { %v54_v22 = vmul.f32 %v50_v21, %v41_v10 }
  0xf4   :  { %v56_v23 = vadd.f32 1e-05, %v54_v22 }
  0xf6   :  { %398 = vrsqrt.f32 %v56_v23  ;;  %vm64_vm3 = vweird.f32 %v56_v23 }
  0xf9   :  { %v53_v25 = vpop.xlane.xlu1 %52 }
  0xfa   :  { %v55_v26 = vmul.f32 %v53_v25, %v41_v10  ;;  %v384_v10 = vld [vmem:[%s543_s4 + $0x18] sm:$0xff] }
  0xfb   :  { %299 = vmatpush.bf16.msra.mxu1 %v384_v10 }
  0xfc   :  { %v399_v28 = vpop.eup %398  ;;  %v57_v29 = vadd.f32 1e-05, %v55_v26  ;;  %v382_v26 = vld [vmem:[%s543_s4 + $0x8] sm:$0xff] }
  0xfd   :  { %v59_v30 = vmul.f32 %v399_v28, %v56_v23  ;;  %vm65_vm2 = vweird.f32 %v399_v28 }
  0xfe   :  { %400 = vrsqrt.f32 %v57_v29  ;;  %vm66_vm4 = vmor %vm64_vm3, %vm65_vm2  ;;  %vm74_vm7 = vweird.f32 %v57_v29 }
  0xff   :  { %v60_v31 = vmul.f32 %v399_v28, %v59_v30 }
 0x101   :  { %v61_v32 = vmul.f32 0.5, %v60_v31 }
 0x103   :  { %v62_v33 = vsub.f32 1.5, %v61_v32  ;;  %v381_v32 = vld [vmem:[%s543_s4] sm:$0xff] }
 0x104   :  { %v401_v34 = vpop.eup %400 }
 0x105   :  { %v63_v35 = vmul.f32 %v399_v28, %v62_v33  ;;  %v69_v36 = vmul.f32 %v401_v34, %v57_v29  ;;  %vm75_vm5 = vweird.f32 %v401_v34 }
 0x106   :  { %vm76_vm8 = vmor %vm74_vm7, %vm75_vm5 }
 0x107   :  { %v67_v38 = vsel %vm66_vm4, %v399_v28, %v63_v35  ;;  %v70_v39 = vmul.f32 %v401_v34, %v69_v36 }
 0x108   :  { %v78_v41 = vmul.f32 %v67_v38, %v44_v13  ;;  %v433_v38 = vmov 0.0  }
 0x109   :  { %v71_v42 = vmul.f32 0.5, %v70_v39  ;;  %97 = vst.msk [vmem:[#allocation3] sm:$0xff] %vm28_vm0, %v433_v38 }
 0x10a   :  { %v84_v43 = vmul.f32 %v394_v37, %v78_v41  ;;  %98 = vst.msk [vmem:[#allocation3 + $0x8] sm:$0xff] %vm28_vm0, %v433_v38 }
 0x10b   :  { %v72_v44 = vsub.f32 1.5, %v71_v42 }
 0x10c   :  { %v90_v45 = vadd.f32 %v395_v40, %v84_v43 }
 0x10d   :  { %v73_v46 = vmul.f32 %v401_v34, %v72_v44 }
 0x10e   :  { %v92_v47 = vpack.c.bf16 %v90_v45, %v90_v45 }
 0x10f   :  { %v77_v48 = vsel %vm76_vm8, %v401_v34, %v73_v46 }
 0x110   :  { %95 = vst.msk [vmem:[#allocation2] sm:$0xf] %vm94_vm6, %v92_v47  ;;  %v79_v49 = vmul.f32 %v77_v48, %v45_v18  ;;  %v383_v18 = vld [vmem:[%s543_s4 + $0x10] sm:$0xff]  ;;  %s434_s4 = smov [#allocation3]  }
 0x111   :  { %300 = vmatpush.bf16.msra.mxu1 %v383_v18  ;;  %s317_s17 = sshll.u32 %s434_s4, 4  ;;  %s318_s17 = int_to_ptr.vmem [resolvable:$true] %s317_s17 }
 0x112   :  { %v85_v50 = vmul.f32 %v394_v37, %v79_v49 }
 0x114   :  { %v91_v51 = vadd.f32 %v395_v40, %v85_v50 }
 0x115   :  { %301 = vmatpush.bf16.msra.mxu1 %v382_v26 }
 0x116   :  { %v93_v52 = vpack.c.bf16 %v91_v51, %v91_v51 }
 0x118   :  { %96 = vst.msk [vmem:[#allocation2 + $0x4] sm:$0xf] %vm94_vm6, %v93_v52 }
 0x119   :  { %302 = vmatpush.bf16.msra.mxu1 %v381_v32 }
 0x11f   :  { %v378_v53 = vld [vmem:[#allocation2] sm:$0xff] }
 0x120   :  { %343 = vmatmul.msk.bf16.vlgmr.msra.gmra.mxu0 %vm28_vm0, %v378_v53 }
 0x19d   :  { %v493_v55 = vpop.f32.mrf.mxu0 }
 0x19e   :  { %v496_v56 = vmul.f32 0.70710677, %v493_v55 }
 0x1a0   :  { %v144_v57 = vmul.f32 %v496_v56, %v496_v56 }
 0x1a2   :  { %v145_v59 = vmin.f32 %v144_v57, 16.0 }
 0x1a4   :  { %v146_v60 = vmul.f32 2.1237322e-06, %v145_v59  ;;  %v157_v61 = vmul.f32 3.8918573e-05, %v145_v59 }
 0x1a5   :  { %v506_v63 = vpop.f32.mrf.mxu0 }
 0x1a6   :  { %v147_v0 = vadd.f32 0.00028619796, %v146_v60  ;;  %v158_v1 = vadd.f32 0.001143296, %v157_v61  ;;  %v509_v2 = vmul.f32 0.70710677, %v506_v63 }
 0x1a8   :  { %v159_v3 = vmul.f32 %v158_v1, %v145_v59  ;;  %v184_v5 = vmul.f32 %v509_v2, %v509_v2  ;;  %v148_v6 = vmul.f32 %v147_v0, %v145_v59 }
 0x1aa   :  { %v160_v7 = vadd.f32 0.014752088, %v159_v3  ;;  %v185_v8 = vmin.f32 %v184_v5, 16.0  ;;  %v149_v13 = vadd.f32 0.0036580483, %v148_v6 }
 0x1ac   :  { %v161_v9 = vmul.f32 %v160_v7, %v145_v59  ;;  %v186_v11 = vmul.f32 2.1237322e-06, %v185_v8  ;;  %v197_v12 = vmul.f32 3.8918573e-05, %v185_v8  ;;  %v150_v21 = vmul.f32 %v149_v13, %v145_v59 }
 0x1ad   :  { %v140_v13 = vmul.f32 0.5, %v493_v55 }
 0x1ae   :  { %v162_v14 = vadd.f32 0.112945676, %v161_v9  ;;  %v187_v15 = vadd.f32 0.00028619796, %v186_v11  ;;  %v198_v16 = vadd.f32 0.001143296, %v197_v12 }
 0x1af   :  { %v151_v28 = vadd.f32 0.05243302, %v150_v21 }
 0x1b0   :  { %v163_v17 = vmul.f32 %v162_v14, %v145_v59  ;;  %v188_v19 = vmul.f32 %v187_v15, %v185_v8  ;;  %v199_v20 = vmul.f32 %v198_v16, %v185_v8  ;;  %v141_v14 = vmul.f32 0.5, %v506_v63 }
 0x1b1   :  { %v152_v34 = vmul.f32 %v151_v28, %v145_v59 }
 0x1b2   :  { %v164_v22 = vadd.f32 0.4994258, %v163_v17  ;;  %v189_v23 = vadd.f32 0.0036580483, %v188_v19  ;;  %v200_v24 = vadd.f32 0.014752088, %v199_v20 }
 0x1b3   :  { %v153_v40 = vadd.f32 0.18741608, %v152_v34  ;;  %v228_v19 = vld [vmem:[#allocation3] sm:$0xff] }
 0x1b4   :  { %v165_v25 = vmul.f32 %v164_v22, %v145_v59  ;;  %v201_v27 = vmul.f32 %v200_v24, %v185_v8  ;;  %v190_v30 = vmul.f32 %v189_v23, %v185_v8 }
 0x1b5   :  { %v154_v45 = vmul.f32 %v153_v40, %v145_v59 }
 0x1b6   :  { %v166_v29 = vadd.f32 1.0, %v165_v25  ;;  %v202_v31 = vadd.f32 0.112945676, %v201_v27  ;;  %v191_v35 = vadd.f32 0.05243302, %v190_v30 }
 0x1b7   :  { %v155_v51 = vadd.f32 1.1283791, %v154_v45 }
 0x1b8   :  { %402 = vrcp.f32 %v166_v29  ;;  %v203_v33 = vmul.f32 %v202_v31, %v185_v8  ;;  %v192_v42 = vmul.f32 %v191_v35, %v185_v8  ;;  %v178_v47 = vand.u32 2147483648, %v166_v29 }
 0x1b9   :  { %v176_v49 = vand.u32 2147483647, %v166_v29  ;;  %vm172_vm10 = vweird.f32 %v166_v29  ;;  %v156_v61 = vmul.f32 %v155_v51, %v496_v56 }
 0x1ba   :  { %v204_v36 = vadd.f32 0.4994258, %v203_v33  ;;  %v193_v48 = vadd.f32 0.18741608, %v192_v42  ;;  %v179_v54 = vor.u32 1.1754944e-38, %v178_v47 }
 0x1bb   :  { %vm177_vm12 = vcmp.eq.f32.partialorder %v176_v49, 8.507059e+37 }
 0x1bc   :  { %v205_v37 = vmul.f32 %v204_v36, %v185_v8  ;;  %v194_v57 = vmul.f32 %v193_v48, %v185_v8 }
 0x1be   :  { %v403_v39 = vpop.eup %402  ;;  %v206_v43 = vadd.f32 1.0, %v205_v37  ;;  %v195_v59 = vadd.f32 1.1283791, %v194_v57 }
 0x1bf   :  { %v168_v41 = vmul.f32 %v403_v39, %v166_v29  ;;  %vm173_vm9 = vweird.f32 %v403_v39 }
 0x1c0   :  { %404 = vrcp.f32 %v206_v43  ;;  %vm174_vm11 = vmor %vm172_vm10, %vm173_vm9  ;;  %v218_v0 = vand.u32 2147483648, %v206_v43  ;;  %v216_v4 = vand.u32 2147483647, %v206_v43  ;;  %vm212_vm14 = vweird.f32 %v206_v43 }
 0x1c1   :  { %v169_v44 = vsub.f32 1.0, %v168_v41  ;;  %v196_v7 = vmul.f32 %v195_v59, %v509_v2  ;;  %v229_v2 = vld [vmem:[#allocation3 + $0x8] sm:$0xff] }
 0x1c2   :  { %v219_v6 = vor.u32 1.1754944e-38, %v218_v0  ;;  %vm217_vm1 = vcmp.eq.f32.partialorder %v216_v4, 8.507059e+37 }
 0x1c3   :  { %v170_v46 = vmul.f32 %v403_v39, %v169_v44 }
 0x1c5   :  { %v171_v50 = vadd.f32 %v403_v39, %v170_v46 }
 0x1c6   :  { %v405_v52 = vpop.eup %404 }
 0x1c7   :  { %v175_v53 = vsel %vm174_vm11, %v403_v39, %v171_v50  ;;  %v208_v58 = vmul.f32 %v405_v52, %v206_v43  ;;  %vm213_vm13 = vweird.f32 %v405_v52 }
 0x1c8   :  { %v180_v60 = vsel %vm177_vm12, %v179_v54, %v175_v53  ;;  %vm214_vm15 = vmor %vm212_vm14, %vm213_vm13 }
 0x1c9   :  { %v209_v62 = vsub.f32 1.0, %v208_v58  ;;  %v181_v1 = vmul.f32 %v180_v60, %v156_v61 }
 0x1cb   :  { %v210_v3 = vmul.f32 %v405_v52, %v209_v62  ;;  %v344_v8 = vclamps-f32 %v181_v1, 1.0 }
 0x1cd   :  { %v211_v5 = vadd.f32 %v405_v52, %v210_v3  ;;  %v224_v56 = vadd.f32 1.0, %v344_v8 }
 0x1cf   :  { %v215_v9 = vsel %vm214_vm15, %v405_v52, %v211_v5  ;;  %v226_v17 = vmul.f32 %v224_v56, %v140_v13 }
 0x1d0   :  { %v220_v10 = vsel %vm217_vm1, %v219_v6, %v215_v9 }
 0x1d1   :  { %v221_v11 = vmul.f32 %v220_v10, %v196_v7 }
 0x1d3   :  { %v345_v12 = vclamps-f32 %v221_v11, 1.0 }
 0x1d5   :  { %v225_v15 = vadd.f32 1.0, %v345_v12 }
 0x1d7   :  { %v227_v16 = vmul.f32 %v225_v15, %v141_v14 }
 0x1d9   :  { %v230_v18 = vpack.c.bf16 %v227_v16, %v226_v17 }
 0x1db   :  { %303 = vmatmul.bf16.vlgmr.msra.gmra.mxu1 %v230_v18 }
 0x258   :  { %v304_v20 = vpop.f32.mrf.mxu1 }
 0x259   :  { %v309_v21 = vadd.f32 %v304_v20, %v228_v19 }
 0x25b   :  { %311 = vst.msk [vmem:[#allocation3] sm:$0xff] %vm28_vm0, %v309_v21 }
 0x260   :  { %v306_v55 = vpop.f32.mrf.mxu1 }
 0x261   :  { %v310_v63 = vadd.f32 %v306_v55, %v229_v2 }
 0x263   :  { %312 = vst.msk [vmem:[#allocation3 + $0x8] sm:$0xff] %vm28_vm0, %v310_v63 }
 0x264   :  { %325 = dma.vmem_to_hbm [thread:$0]  %s318_s17, 256, %s320_s20, [#allocation4], %s435_s21, %s435_s21, %s436_s0  }
 0x265   :  { %430 = dma.done.wait [#allocation4], 256  }
 0x266   :  { %431 = vsyncadd [#allocation4], 4294967040 }
 0x267   :  { %330 = vsyncpa [#allocation4], 1 }

</bundles_post_ra>
